<compile_context>
chip_gen: v5e
topology: v5e:2x2
jax: 0.10.0
libtpu: 0.0.40
codegen_flags: <defaults>
</compile_context>

<pallas_src>
import functools

import jax
import jax.numpy as jnp
from jax.experimental import pallas as pl
from jax.experimental.pallas import tpu as pltpu

_LANE = 128
_SUBLANE = 8
# Fits comfortably inside v7x's 64 MiB/TC VMEM with headroom; v5e/v6e have
# 128 MiB so this is never the binding constraint for these small kernels.
_VMEM_LIMIT_BYTES = 48 * 1024 * 1024


def _round_up(n, m):
    return ((n + m - 1) // m) * m


def _cdiv(a, b):
    return -(-a // b)


def _masked_input_dim(input_dim, mask_dim):
    """Reproduce KPM_Nonlinear_Model.__init__ input_dim masking logic."""
    if len(mask_dim) == 1:
        return input_dim - mask_dim[0]
    elif len(mask_dim) == 2:
        return input_dim - (mask_dim[1] - mask_dim[0])
    elif len(mask_dim) > 2:
        masked = 0
        for i in range(0, len(mask_dim), 2):
            masked += mask_dim[i + 1] - mask_dim[i]
        return input_dim - masked
    return input_dim


def _pick_row_tile(rows, max_tile):
    """Row/batch tile that (a) minimizes dead padded rows and (b) gives the
    'parallel' grid axis >=2 steps when the problem is big enough (v7x shards
    parallel axes across its 2 TensorCores; a 1-step axis idles half the chip)."""
    rows = max(rows, 1)
    n_tiles = max(1, _cdiv(rows, max_tile))
    if rows >= 2 * _SUBLANE:
        n_tiles = max(n_tiles, 2)
    tile = _round_up(_cdiv(rows, n_tiles), _SUBLANE)
    padded = _round_up(rows, tile)
    return tile, padded


def _pad_rows(x, rows_pad):
    r = x.shape[0]
    if rows_pad != r:
        x = jnp.pad(x, ((0, rows_pad - r),) + ((0, 0),) * (x.ndim - 1))
    return x


def _pad_cols(a, cols_pad):
    c = a.shape[-1]
    if cols_pad != c:
        a = jnp.pad(a, ((0, 0),) * (a.ndim - 1) + ((0, cols_pad - c),))
    return a


def _const_spec(shape):
    """Grid-invariant operand (weight/bias): constant block index keeps it
    VMEM-resident across grid steps (no re-DMA per step)."""
    return pl.BlockSpec(shape, lambda *_: (0,) * len(shape))


def _sigmoid(v):
    # jax.nn.sigmoid (lax.logistic): numerically robust; transcendental path.
    return jax.nn.sigmoid(v)


# ----------------------------------------------------------------------------
# Fused autoencoder kernel: x_encoder + x_decoder in one pallas_call.
# ----------------------------------------------------------------------------
def _autoencoder_kernel(n_enc, n_dec, *refs):
    """Encoder MLP -> write zx (bf16) -> decoder MLP on the in-VMEM latent ->
    write x_recon (bf16). bf16 MXU inputs, f32 accumulation."""
    x_ref = refs[0]
    enc = refs[1:1 + 2 * n_enc]
    dec = refs[1 + 2 * n_enc:1 + 2 * (n_enc + n_dec)]
    zx_ref, xr_ref = refs[-2], refs[-1]

    def run_mlp(h, flat, n):                           # static layer unroll
        for i in range(n):
            w = flat[2 * i][...]                       # bf16
            b = flat[2 * i + 1][...]                   # f32 (1, d)
            acc = jnp.dot(h, w, preferred_element_type=jnp.float32) + b
            h = jnp.maximum(acc, 0.0).astype(jnp.bfloat16) if i < n - 1 else acc
        return h                                       # f32

    zx = run_mlp(x_ref[...], enc, n_enc)               # (tile, latent_pad) f32
    zx_ref[...] = zx.astype(zx_ref.dtype)              # bf16, lane-dense
    xr = run_mlp(zx.astype(jnp.bfloat16), dec, n_dec)  # padded latent lanes hit zero weight rows
    xr_ref[...] = xr.astype(xr_ref.dtype)


def autoencoder_forward(x2d, enc_params, dec_params, *, max_tile_rows=1024):
    """Returns (zx [R, latent], x_recon [R, d_rec]) as bf16."""
    R, d_in = x2d.shape
    latent = enc_params[-1][0].shape[1]
    d_rec = dec_params[-1][0].shape[1]
    latent_pad = _round_up(latent, _LANE)
    d_rec_pad = _round_up(d_rec, _LANE)

    tile_r, r_pad = _pick_row_tile(R, max_tile_rows)
    x_bf = _pad_rows(x2d.astype(jnp.bfloat16), r_pad)

    flat = []
    n_enc = len(enc_params)
    for li, (w, b) in enumerate(enc_params):
        if li == n_enc - 1:
            w = _pad_cols(w, latent_pad)
            b = _pad_cols(b, latent_pad)
        flat.append(w.astype(jnp.bfloat16))
        flat.append(b.astype(jnp.float32))
    n_dec = len(dec_params)
    for li, (w, b) in enumerate(dec_params):
        if li == 0 and latent_pad != latent:
            # zero rows: padded latent lanes contribute nothing to the decoder
            w = jnp.pad(w, ((0, latent_pad - latent), (0, 0)))
        if li == n_dec - 1:
            w = _pad_cols(w, d_rec_pad)
            b = _pad_cols(b, d_rec_pad)
        flat.append(w.astype(jnp.bfloat16))
        flat.append(b.astype(jnp.float32))

    kernel = functools.partial(_autoencoder_kernel, n_enc, n_dec)
    in_specs = [pl.BlockSpec((tile_r, d_in), lambda r: (r, 0))]
    in_specs += [_const_spec(a.shape) for a in flat]

    zx, xr = pl.pallas_call(
        kernel,
        out_shape=(jax.ShapeDtypeStruct((r_pad, latent_pad), jnp.bfloat16),
                   jax.ShapeDtypeStruct((r_pad, d_rec_pad), jnp.bfloat16)),
        grid_spec=pltpu.PrefetchScalarGridSpec(
            num_scalar_prefetch=0,
            grid=(r_pad // tile_r,),
            in_specs=in_specs,
            out_specs=(pl.BlockSpec((tile_r, latent_pad), lambda r: (r, 0)),
                       pl.BlockSpec((tile_r, d_rec_pad), lambda r: (r, 0))),
        ),
        compiler_params=pltpu.CompilerParams(
            dimension_semantics=("parallel",),
            vmem_limit_bytes=_VMEM_LIMIT_BYTES,
        ),
    )(x_bf, *flat)
    return zx[:R, :latent], xr[:R, :d_rec]


# ----------------------------------------------------------------------------
# Split-input fused MLP kernel (z_act): first Linear consumes several parts,
# equivalent to Linear(concat(parts)) but the concat never hits HBM.
# ----------------------------------------------------------------------------
def _split_mlp_kernel(n_parts, n_layers, *refs):
    x_refs = refs[:n_parts]
    params = refs[n_parts:-1]
    o_ref = refs[-1]

    # Layer 0: row-wise split weights, partial dots accumulate into f32 acc.
    acc = params[n_parts][...]                          # bias0 (1, d1) f32
    for j in range(n_parts):
        acc = acc + jnp.dot(x_refs[j][...], params[j][...],
                            preferred_element_type=jnp.float32)
    h = jnp.maximum(acc, 0.0).astype(jnp.bfloat16) if n_layers > 1 else acc

    idx = n_parts + 1
    for i in range(1, n_layers):                        # static unroll
        w = params[idx][...]
        b = params[idx + 1][...]
        idx += 2
        acc = jnp.dot(h, w, preferred_element_type=jnp.float32) + b
        h = jnp.maximum(acc, 0.0).astype(jnp.bfloat16) if i < n_layers - 1 else acc
    o_ref[...] = h.astype(o_ref.dtype)


def split_mlp_forward(x_parts, params, *, max_tile_rows=1024):
    """Fused MLP over rows. x_parts: list of [R, d_i]; returns bf16 [R, d_out]."""
    R = x_parts[0].shape[0]
    n_parts = len(x_parts)
    n_layers = len(params)
    d_out = params[-1][0].shape[1]
    d_out_pad = _round_up(d_out, _LANE)

    tile_r, r_pad = _pick_row_tile(R, max_tile_rows)
    parts = [_pad_rows(p.astype(jnp.bfloat16), r_pad) for p in x_parts]

    w0, b0 = params[0]
    flat, offs = [], 0
    for p in x_parts:
        d = p.shape[1]
        flat.append(w0[offs:offs + d, :].astype(jnp.bfloat16))
        offs += d
    assert offs == w0.shape[0]
    flat.append(b0.astype(jnp.float32))
    for li in range(1, n_layers):
        w, b = params[li]
        if li == n_layers - 1:
            w = _pad_cols(w, d_out_pad)
            b = _pad_cols(b, d_out_pad)
        flat.append(w.astype(jnp.bfloat16))
        flat.append(b.astype(jnp.float32))

    kernel = functools.partial(_split_mlp_kernel, n_parts, n_layers)
    in_specs = [pl.BlockSpec((tile_r, p.shape[1]), lambda r: (r, 0)) for p in parts]
    in_specs += [_const_spec(a.shape) for a in flat]

    out = pl.pallas_call(
        kernel,
        out_shape=jax.ShapeDtypeStruct((r_pad, d_out_pad), jnp.bfloat16),
        grid_spec=pltpu.PrefetchScalarGridSpec(
            num_scalar_prefetch=0,
            grid=(r_pad // tile_r,),
            in_specs=in_specs,
            out_specs=pl.BlockSpec((tile_r, d_out_pad), lambda r: (r, 0)),
        ),
        compiler_params=pltpu.CompilerParams(
            dimension_semantics=("parallel",),
            vmem_limit_bytes=_VMEM_LIMIT_BYTES,
        ),
    )(*parts, *flat)
    return out[:R, :d_out]


# ----------------------------------------------------------------------------
# LSTM kernel (dynamics / act_decoder): time-chunked recurrence + hoisted head.
# ----------------------------------------------------------------------------
def _lstm_chunk_kernel(hidden, n_parts, t_chunk, tb, *refs):
    """One VMEM time-chunk of a 1-layer LSTM with split inputs.

    The recurrence is fully unrolled over the (static) chunk; h (bf16) / c
    (f32) live in VMEM scratch and carry across time chunks. The per-step
    Linear head is hoisted out of the recurrence: all chunk h_t are buffered
    and projected with ONE (t_chunk*tb, H) matmul.

    NOTE: correctness of the h/c carry requires the time grid axis to stay the
    innermost axis and be marked "arbitrary" (batch tiles outer, "parallel").
    """
    x_refs = refs[:n_parts]
    w_ih_refs = refs[n_parts:2 * n_parts]
    w_hh_ref, b_ref, w_ho_ref, b_ho_ref = refs[2 * n_parts:2 * n_parts + 4]
    o_ref = refs[2 * n_parts + 4]
    h_ref, c_ref, hbuf_ref = refs[2 * n_parts + 5:]

    @pl.when(pl.program_id(1) == 0)
    def _():
        h_ref[...] = jnp.zeros_like(h_ref)
        c_ref[...] = jnp.zeros_like(c_ref)

    w_hh = w_hh_ref[...]                                # bf16 (H, 4H)
    b_g = b_ref[...]                                    # f32  (1, 4H)
    w_ihs = [r[...] for r in w_ih_refs]                 # bf16 (d_i, 4H)

    h = h_ref[...]                                      # bf16 (tb, H)
    c = c_ref[...]                                      # f32  (tb, H)
    # Full static unroll of the chunk (equivalent to fori_loop(unroll=True));
    # keeps every index static so all loads/stores are aligned, unmasked ops.
    for t in range(t_chunk):
        gates = jnp.dot(h, w_hh, preferred_element_type=jnp.float32) + b_g
        for j in range(n_parts):
            gates = gates + jnp.dot(x_refs[j][t], w_ihs[j],
                                    preferred_element_type=jnp.float32)
        i_g = _sigmoid(gates[:, 0 * hidden:1 * hidden])
        f_g = _sigmoid(gates[:, 1 * hidden:2 * hidden])
        g_g = jnp.tanh(gates[:, 2 * hidden:3 * hidden])
        o_g = _sigmoid(gates[:, 3 * hidden:4 * hidden])
        c = f_g * c + i_g * g_g
        h = (o_g * jnp.tanh(c)).astype(jnp.bfloat16)
        hbuf_ref[t * tb:(t + 1) * tb, :] = h
    h_ref[...] = h
    c_ref[...] = c

    # Hoisted output projection for the whole chunk: one large-M matmul
    # instead of t_chunk tiny (tb, H) matmuls inside the recurrence.
    y = (jnp.dot(hbuf_ref[...], w_ho_ref[...],
                 preferred_element_type=jnp.float32) + b_ho_ref[...])
    y = y.astype(o_ref.dtype)
    for t in range(t_chunk):
        o_ref[t] = y[t * tb:(t + 1) * tb, :]


def lstm_forward(x_parts, p, *, max_tile_batch=256, max_time_chunk=16):
    """Single-layer LSTM + per-timestep Linear head.

    x_parts: list of [B, T, d_i] arrays whose channel-concat is the LSTM input
    (the concat is never materialized; w_ih is split row-wise instead).
    Returns bf16 [B, T, d_out].
    """
    B, T = x_parts[0].shape[0], x_parts[0].shape[1]
    hidden = p["w_hh"].shape[0]
    d_out = p["w_ho"].shape[1]
    d_out_pad = _round_up(d_out, _LANE)

    tb, b_pad = _pick_row_tile(B, max_tile_batch)
    t_chunk = min(max_time_chunk, T)
    t_pad = _round_up(T, t_chunk)

    # Time-major layout so block (sublane, lane) dims are (batch, feature).
    parts = []
    for xp in x_parts:
        xt = jnp.transpose(xp, (1, 0, 2)).astype(jnp.bfloat16)   # (T, B, d_i)
        xt = jnp.pad(xt, ((0, t_pad - T), (0, b_pad - B), (0, 0)))
        parts.append(xt)

    w_ih_full = p["w_ih"].astype(jnp.bfloat16)
    w_ihs, offs = [], 0
    for xp in x_parts:
        d = xp.shape[2]
        w_ihs.append(w_ih_full[offs:offs + d, :])
        offs += d
    assert offs == w_ih_full.shape[0]

    w_hh = p["w_hh"].astype(jnp.bfloat16)
    b_g = p["b"].astype(jnp.float32)
    w_ho = _pad_cols(p["w_ho"], d_out_pad).astype(jnp.bfloat16)
    b_ho = _pad_cols(p["b_o"], d_out_pad).astype(jnp.float32)
    weights = w_ihs + [w_hh, b_g, w_ho, b_ho]

    kernel = functools.partial(_lstm_chunk_kernel, hidden, len(x_parts),
                               t_chunk, tb)
    in_specs = [pl.BlockSpec((t_chunk, tb, xp.shape[2]),
                             lambda bt, tc: (tc, bt, 0)) for xp in parts]
    in_specs += [_const_spec(a.shape) for a in weights]

    out = pl.pallas_call(
        kernel,
        out_shape=jax.ShapeDtypeStruct((t_pad, b_pad, d_out_pad), jnp.bfloat16),
        grid_spec=pltpu.PrefetchScalarGridSpec(
            num_scalar_prefetch=0,
            # Batch tiles outer ("parallel"), time chunks innermost
            # ("arbitrary") -- required for the h/c scratch carry.
            grid=(b_pad // tb, t_pad // t_chunk),
            in_specs=in_specs,
            out_specs=pl.BlockSpec((t_chunk, tb, d_out_pad),
                                   lambda bt, tc: (tc, bt, 0)),
            scratch_shapes=[pltpu.VMEM((tb, hidden), jnp.bfloat16),        # h
                            pltpu.VMEM((tb, hidden), jnp.float32),         # c
                            pltpu.VMEM((t_chunk * tb, hidden), jnp.bfloat16)],
        ),
        compiler_params=pltpu.CompilerParams(
            dimension_semantics=("parallel", "arbitrary"),
            vmem_limit_bytes=_VMEM_LIMIT_BYTES,
        ),
    )(*parts, *weights)
    return jnp.transpose(out, (1, 0, 2))[:B, :T, :d_out]                  # bf16


# ----------------------------------------------------------------------------
# KPM_Nonlinear_Model.forward orchestration (pure indexing glue stays in JAX)
# ----------------------------------------------------------------------------
def get_target(x, k):
    """KPM_Nonlinear_Model.get_target (k == -1: last-step target; else shift-k)."""
    B, T, D = x.shape
    if k == -1:
        return jnp.broadcast_to(x[:, -1:, :], (B, T - 2, D))
    idx = jnp.minimum(jnp.arange(T) + k, T - 1)
    return x[:, idx, :][:, :-2, :]


def kpm_forward(x, params, target_k=-1):
    """forward(): (x_recon, a_pred, zx_prime, pred_zx_prime, zx)."""
    B, T, D = x.shape
    latent = params["x_encoder"][-1][0].shape[1]

    zx2d, xrec2d = autoencoder_forward(
        x.reshape(B * T, D), params["x_encoder"], params["x_decoder"])
    zx = zx2d.reshape(B, T, latent)                     # bf16
    x_recon = xrec2d.reshape(B, T, D)                   # bf16

    zx_current = zx[:, 1:-1, :]
    zx_prime = zx[:, 2:, :]

    x_target = get_target(x, target_k)
    R2 = B * (T - 2)
    idm_za = split_mlp_forward(
        [x[:, 0:-2, :].reshape(R2, D),
         x[:, 1:-1, :].reshape(R2, D),
         x_target.reshape(R2, D)],
        params["z_act"]).reshape(B, T - 2, latent)      # bf16

    pred_zx_prime = lstm_forward([zx_current, idm_za], params["dynamics"])
    a_pred = lstm_forward([idm_za], params["act_decoder"])

    f32 = jnp.float32
    return (x_recon.astype(f32), a_pred.astype(f32), zx_prime.astype(f32),
            pred_zx_prime.astype(f32), zx.astype(f32))


# ----------------------------------------------------------------------------
# Pure-JAX reference (same bf16/f32 mixed precision flow) + init helpers
# ----------------------------------------------------------------------------
def _ref_mlp(x2d, params):
    h = x2d.astype(jnp.bfloat16)
    for i, (w, b) in enumerate(params):
        acc = jnp.dot(h, w.astype(jnp.bfloat16),
                      preferred_element_type=jnp.float32) + b
        h = jnp.maximum(acc, 0.0).astype(jnp.bfloat16) if i < len(params) - 1 else acc
    return h


def _ref_lstm(x_seq, p):
    B, T, _ = x_seq.shape
    H = p["w_hh"].shape[0]
    w_ih = p["w_ih"].astype(jnp.bfloat16)
    w_hh = p["w_hh"].astype(jnp.bfloat16)
    w_ho = p["w_ho"].astype(jnp.bfloat16)
    h = jnp.zeros((B, H), jnp.bfloat16)
    c = jnp.zeros((B, H), jnp.float32)
    ys = []
    for t in range(T):
        x_t = x_seq[:, t, :].astype(jnp.bfloat16)
        gates = (jnp.dot(x_t, w_ih, preferred_element_type=jnp.float32)
                 + jnp.dot(h, w_hh, preferred_element_type=jnp.float32)
                 + p["b"])
        i_g = _sigmoid(gates[:, :H])
        f_g = _sigmoid(gates[:, H:2 * H])
        g_g = jnp.tanh(gates[:, 2 * H:3 * H])
        o_g = _sigmoid(gates[:, 3 * H:])
        c = f_g * c + i_g * g_g
        h = (o_g * jnp.tanh(c)).astype(jnp.bfloat16)
        ys.append(jnp.dot(h, w_ho, preferred_element_type=jnp.float32) + p["b_o"])
    return jnp.stack(ys, axis=1).astype(jnp.bfloat16)


def kpm_forward_reference(x, params, target_k=-1):
    B, T, D = x.shape
    latent = params["x_encoder"][-1][0].shape[1]
    zx_bf = _ref_mlp(x.reshape(B * T, D), params["x_encoder"]).astype(jnp.bfloat16)
    x_recon = _ref_mlp(zx_bf, params["x_decoder"]).astype(jnp.bfloat16)
    zx = zx_bf.reshape(B, T, latent)
    x_recon = x_recon.reshape(B, T, D)
    zx_current = zx[:, 1:-1, :]
    zx_prime = zx[:, 2:, :]
    x_target = get_target(x, target_k)
    z_act_in = jnp.concatenate([x[:, 0:-2, :], x[:, 1:-1, :], x_target], axis=-1)
    idm_za = (_ref_mlp(z_act_in.reshape(B * (T - 2), 3 * D), params["z_act"])
              .astype(jnp.bfloat16).reshape(B, T - 2, latent))
    pred_zx_prime = _ref_lstm(
        jnp.concatenate([zx_current, idm_za], axis=-1), params["dynamics"])
    a_pred = _ref_lstm(idm_za, params["act_decoder"])
    f32 = jnp.float32
    return (x_recon.astype(f32), a_pred.astype(f32), zx_prime.astype(f32),
            pred_zx_prime.astype(f32), zx.astype(f32))


def init_mlp_params(key, dims):
    """Kaiming-normal(fan_out) weights (module init); small random biases so
    the bias path stays testable. W: [d_in, d_out], b: [1, d_out]."""
    params = []
    for i in range(len(dims) - 1):
        key, kw, kb = jax.random.split(key, 3)
        std = (2.0 / dims[i + 1]) ** 0.5
        w = std * jax.random.normal(kw, (dims[i], dims[i + 1]), jnp.float32)
        b = 0.01 * jax.random.normal(kb, (1, dims[i + 1]), jnp.float32)
        params.append((w, b))
    return params


def init_lstm_params(key, d_in, hidden, d_out):
    ks = jax.random.split(key, 5)
    return {
        "w_ih": (1.0 / d_in ** 0.5)
                * jax.random.normal(ks[0], (d_in, 4 * hidden), jnp.float32),
        "w_hh": (1.0 / hidden ** 0.5)
                * jax.random.normal(ks[1], (hidden, 4 * hidden), jnp.float32),
        "b": 0.01 * jax.random.normal(ks[2], (1, 4 * hidden), jnp.float32),
        "w_ho": (2.0 / d_out) ** 0.5
                * jax.random.normal(ks[3], (hidden, d_out), jnp.float32),
        "b_o": 0.01 * jax.random.normal(ks[4], (1, d_out), jnp.float32),
    }


if __name__ == "__main__":
    # Small synthetic config (keeps the module's hardcoded 256-wide z_act /
    # dynamics / act_decoder hidden sizes).
    input_dim = 36
    mask_dim = [4]                 # -> effective input width 32
    hidden_dims = [32, 32]
    latent_dim = 16
    action_dim = 4
    target_k = -1
    B, T = 2, 8

    d_in = _masked_input_dim(input_dim, mask_dim)

    key = jax.random.PRNGKey(0)
    key, kx, k1, k2, k3, k4, k5 = jax.random.split(key, 7)
    x = jax.random.normal(kx, (B, T, d_in), jnp.float32)

    params = {
        "x_encoder": init_mlp_params(k1, [d_in] + hidden_dims + [latent_dim]),
        "x_decoder": init_mlp_params(k2, [latent_dim] + hidden_dims + [d_in]),
        "z_act": init_mlp_params(k3, [3 * d_in, 256, 256, latent_dim]),
        "dynamics": init_lstm_params(k4, 2 * latent_dim, 256, latent_dim),
        "act_decoder": init_lstm_params(k5, latent_dim, 256, action_dim),
    }

    outs = jax.block_until_ready(kpm_forward(x, params, target_k))
    refs = jax.block_until_ready(kpm_forward_reference(x, params, target_k))

    x_recon, a_pred, zx_prime, pred_zx_prime, zx = outs
    assert x_recon.shape == (B, T, d_in)
    assert a_pred.shape == (B, T - 2, action_dim)
    assert zx_prime.shape == (B, T - 2, latent_dim)
    assert pred_zx_prime.shape == (B, T - 2, latent_dim)
    assert zx.shape == (B, T, latent_dim)

    names = ["x_recon", "a_pred", "zx_prime", "pred_zx_prime", "zx"]
    for name, got, want in zip(names, outs, refs):
        assert jnp.allclose(got, want, atol=3e-2, rtol=3e-2), \
            f"mismatch vs JAX reference: {name}"

    print("KERNEL_OK")
</pallas_src>

<mosaic_0001>
module attributes {stable_mosaic.version = 11 : i64} {
  func.func @_autoencoder_kernel(%arg0: i32, %arg1: memref<8x32xbf16, #tpu.memory_space<vmem>>, %arg2: memref<32x32xbf16, #tpu.memory_space<vmem>>, %arg3: memref<1x32xf32, #tpu.memory_space<vmem>>, %arg4: memref<32x32xbf16, #tpu.memory_space<vmem>>, %arg5: memref<1x32xf32, #tpu.memory_space<vmem>>, %arg6: memref<32x128xbf16, #tpu.memory_space<vmem>>, %arg7: memref<1x128xf32, #tpu.memory_space<vmem>>, %arg8: memref<128x32xbf16, #tpu.memory_space<vmem>>, %arg9: memref<1x32xf32, #tpu.memory_space<vmem>>, %arg10: memref<32x32xbf16, #tpu.memory_space<vmem>>, %arg11: memref<1x32xf32, #tpu.memory_space<vmem>>, %arg12: memref<32x128xbf16, #tpu.memory_space<vmem>>, %arg13: memref<1x128xf32, #tpu.memory_space<vmem>>, %arg14: memref<8x128xbf16, #tpu.memory_space<vmem>>, %arg15: memref<8x128xbf16, #tpu.memory_space<vmem>>) attributes {dimension_semantics = [#tpu.dimension_semantics<parallel>], iteration_bounds = array<i64: 2>, scalar_prefetch = 0 : i64, scratch_operands = 0 : i64, tpu.core_type = #tpu.core_type<tc>, window_params = [{transform_indices = @transform_0, window_bounds = array<i64: 8, 32>}, {pipeline_mode = #tpu.pipeline_mode<synchronous>, transform_indices = @transform_1, window_bounds = array<i64: 32, 32>}, {pipeline_mode = #tpu.pipeline_mode<synchronous>, transform_indices = @transform_2, window_bounds = array<i64: 1, 32>}, {pipeline_mode = #tpu.pipeline_mode<synchronous>, transform_indices = @transform_3, window_bounds = array<i64: 32, 32>}, {pipeline_mode = #tpu.pipeline_mode<synchronous>, transform_indices = @transform_4, window_bounds = array<i64: 1, 32>}, {pipeline_mode = #tpu.pipeline_mode<synchronous>, transform_indices = @transform_5, window_bounds = array<i64: 32, 128>}, {pipeline_mode = #tpu.pipeline_mode<synchronous>, transform_indices = @transform_6, window_bounds = array<i64: 1, 128>}, {pipeline_mode = #tpu.pipeline_mode<synchronous>, transform_indices = @transform_7, window_bounds = array<i64: 128, 32>}, {pipeline_mode = #tpu.pipeline_mode<synchronous>, transform_indices = @transform_8, window_bounds = array<i64: 1, 32>}, {pipeline_mode = #tpu.pipeline_mode<synchronous>, transform_indices = @transform_9, window_bounds = array<i64: 32, 32>}, {pipeline_mode = #tpu.pipeline_mode<synchronous>, transform_indices = @transform_10, window_bounds = array<i64: 1, 32>}, {pipeline_mode = #tpu.pipeline_mode<synchronous>, transform_indices = @transform_11, window_bounds = array<i64: 32, 128>}, {pipeline_mode = #tpu.pipeline_mode<synchronous>, transform_indices = @transform_12, window_bounds = array<i64: 1, 128>}, {transform_indices = @transform_13, window_bounds = array<i64: 8, 128>}, {transform_indices = @transform_14, window_bounds = array<i64: 8, 128>}]} {
    %c0 = arith.constant 0 : index
    %c0_0 = arith.constant 0 : index
    %0 = vector.load %arg1[%c0, %c0_0] : memref<8x32xbf16, #tpu.memory_space<vmem>>, vector<8x32xbf16>
    %c0_1 = arith.constant 0 : index
    %c0_2 = arith.constant 0 : index
    %1 = vector.load %arg2[%c0_1, %c0_2] : memref<32x32xbf16, #tpu.memory_space<vmem>>, vector<32x32xbf16>
    %c0_3 = arith.constant 0 : index
    %c0_4 = arith.constant 0 : index
    %2 = vector.load %arg3[%c0_3, %c0_4] : memref<1x32xf32, #tpu.memory_space<vmem>>, vector<1x32xf32>
    %cst = arith.constant dense<0.000000e+00> : vector<8x32xf32>
    %3 = tpu.matmul %0, %1, %cst {dimension_numbers = #tpu.dot_dimension_numbers<[1], [0], [0], [1], [0, 0, 1, 1], [], []>} : vector<8x32xbf16>, vector<32x32xbf16>, vector<8x32xf32> -> vector<8x32xf32>
    %4 = vector.broadcast %2 : vector<1x32xf32> to vector<8x32xf32>
    %5 = arith.addf %3, %4 : vector<8x32xf32>
    %cst_5 = arith.constant 0.000000e+00 : f32
    %6 = vector.broadcast %cst_5 : f32 to vector<8x32xf32>
    %7 = arith.maximumf %5, %6 : vector<8x32xf32>
    %8 = arith.truncf %7 : vector<8x32xf32> to vector<8x32xbf16>
    %c0_6 = arith.constant 0 : index
    %c0_7 = arith.constant 0 : index
    %9 = vector.load %arg4[%c0_6, %c0_7] : memref<32x32xbf16, #tpu.memory_space<vmem>>, vector<32x32xbf16>
    %c0_8 = arith.constant 0 : index
    %c0_9 = arith.constant 0 : index
    %10 = vector.load %arg5[%c0_8, %c0_9] : memref<1x32xf32, #tpu.memory_space<vmem>>, vector<1x32xf32>
    %cst_10 = arith.constant dense<0.000000e+00> : vector<8x32xf32>
    %11 = tpu.matmul %8, %9, %cst_10 {dimension_numbers = #tpu.dot_dimension_numbers<[1], [0], [0], [1], [0, 0, 1, 1], [], []>} : vector<8x32xbf16>, vector<32x32xbf16>, vector<8x32xf32> -> vector<8x32xf32>
    %12 = vector.broadcast %10 : vector<1x32xf32> to vector<8x32xf32>
    %13 = arith.addf %11, %12 : vector<8x32xf32>
    %cst_11 = arith.constant 0.000000e+00 : f32
    %14 = vector.broadcast %cst_11 : f32 to vector<8x32xf32>
    %15 = arith.maximumf %13, %14 : vector<8x32xf32>
    %16 = arith.truncf %15 : vector<8x32xf32> to vector<8x32xbf16>
    %c0_12 = arith.constant 0 : index
    %c0_13 = arith.constant 0 : index
    %17 = vector.load %arg6[%c0_12, %c0_13] : memref<32x128xbf16, #tpu.memory_space<vmem>>, vector<32x128xbf16>
    %c0_14 = arith.constant 0 : index
    %c0_15 = arith.constant 0 : index
    %18 = vector.load %arg7[%c0_14, %c0_15] : memref<1x128xf32, #tpu.memory_space<vmem>>, vector<1x128xf32>
    %cst_16 = arith.constant dense<0.000000e+00> : vector<8x128xf32>
    %19 = tpu.matmul %16, %17, %cst_16 {dimension_numbers = #tpu.dot_dimension_numbers<[1], [0], [0], [1], [0, 0, 1, 1], [], []>} : vector<8x32xbf16>, vector<32x128xbf16>, vector<8x128xf32> -> vector<8x128xf32>
    %20 = vector.broadcast %18 : vector<1x128xf32> to vector<8x128xf32>
    %21 = arith.addf %19, %20 : vector<8x128xf32>
    %22 = arith.truncf %21 : vector<8x128xf32> to vector<8x128xbf16>
    %c0_17 = arith.constant 0 : index
    %c0_18 = arith.constant 0 : index
    %23 = vector.load %arg14[%c0_17, %c0_18] : memref<8x128xbf16, #tpu.memory_space<vmem>>, vector<8x128xbf16>
    tpu.vector_store %arg14[%c0_17, %c0_18], %22 {strides = array<i32>} : memref<8x128xbf16, #tpu.memory_space<vmem>>, vector<8x128xbf16>,
    %24 = arith.truncf %21 : vector<8x128xf32> to vector<8x128xbf16>
    %c0_19 = arith.constant 0 : index
    %c0_20 = arith.constant 0 : index
    %25 = vector.load %arg8[%c0_19, %c0_20] : memref<128x32xbf16, #tpu.memory_space<vmem>>, vector<128x32xbf16>
    %c0_21 = arith.constant 0 : index
    %c0_22 = arith.constant 0 : index
    %26 = vector.load %arg9[%c0_21, %c0_22] : memref<1x32xf32, #tpu.memory_space<vmem>>, vector<1x32xf32>
    %cst_23 = arith.constant dense<0.000000e+00> : vector<8x32xf32>
    %27 = tpu.matmul %24, %25, %cst_23 {dimension_numbers = #tpu.dot_dimension_numbers<[1], [0], [0], [1], [0, 0, 1, 1], [], []>} : vector<8x128xbf16>, vector<128x32xbf16>, vector<8x32xf32> -> vector<8x32xf32>
    %28 = vector.broadcast %26 : vector<1x32xf32> to vector<8x32xf32>
    %29 = arith.addf %27, %28 : vector<8x32xf32>
    %cst_24 = arith.constant 0.000000e+00 : f32
    %30 = vector.broadcast %cst_24 : f32 to vector<8x32xf32>
    %31 = arith.maximumf %29, %30 : vector<8x32xf32>
    %32 = arith.truncf %31 : vector<8x32xf32> to vector<8x32xbf16>
    %c0_25 = arith.constant 0 : index
    %c0_26 = arith.constant 0 : index
    %33 = vector.load %arg10[%c0_25, %c0_26] : memref<32x32xbf16, #tpu.memory_space<vmem>>, vector<32x32xbf16>
    %c0_27 = arith.constant 0 : index
    %c0_28 = arith.constant 0 : index
    %34 = vector.load %arg11[%c0_27, %c0_28] : memref<1x32xf32, #tpu.memory_space<vmem>>, vector<1x32xf32>
    %cst_29 = arith.constant dense<0.000000e+00> : vector<8x32xf32>
    %35 = tpu.matmul %32, %33, %cst_29 {dimension_numbers = #tpu.dot_dimension_numbers<[1], [0], [0], [1], [0, 0, 1, 1], [], []>} : vector<8x32xbf16>, vector<32x32xbf16>, vector<8x32xf32> -> vector<8x32xf32>
    %36 = vector.broadcast %34 : vector<1x32xf32> to vector<8x32xf32>
    %37 = arith.addf %35, %36 : vector<8x32xf32>
    %cst_30 = arith.constant 0.000000e+00 : f32
    %38 = vector.broadcast %cst_30 : f32 to vector<8x32xf32>
    %39 = arith.maximumf %37, %38 : vector<8x32xf32>
    %40 = arith.truncf %39 : vector<8x32xf32> to vector<8x32xbf16>
    %c0_31 = arith.constant 0 : index
    %c0_32 = arith.constant 0 : index
    %41 = vector.load %arg12[%c0_31, %c0_32] : memref<32x128xbf16, #tpu.memory_space<vmem>>, vector<32x128xbf16>
    %c0_33 = arith.constant 0 : index
    %c0_34 = arith.constant 0 : index
    %42 = vector.load %arg13[%c0_33, %c0_34] : memref<1x128xf32, #tpu.memory_space<vmem>>, vector<1x128xf32>
    %cst_35 = arith.constant dense<0.000000e+00> : vector<8x128xf32>
    %43 = tpu.matmul %40, %41, %cst_35 {dimension_numbers = #tpu.dot_dimension_numbers<[1], [0], [0], [1], [0, 0, 1, 1], [], []>} : vector<8x32xbf16>, vector<32x128xbf16>, vector<8x128xf32> -> vector<8x128xf32>
    %44 = vector.broadcast %42 : vector<1x128xf32> to vector<8x128xf32>
    %45 = arith.addf %43, %44 : vector<8x128xf32>
    %46 = arith.truncf %45 : vector<8x128xf32> to vector<8x128xbf16>
    %c0_36 = arith.constant 0 : index
    %c0_37 = arith.constant 0 : index
    %47 = vector.load %arg15[%c0_36, %c0_37] : memref<8x128xbf16, #tpu.memory_space<vmem>>, vector<8x128xbf16>
    tpu.vector_store %arg15[%c0_36, %c0_37], %46 {strides = array<i32>} : memref<8x128xbf16, #tpu.memory_space<vmem>>, vector<8x128xbf16>,
    return
  }
  func.func @transform_0(%arg0: i32) -> (i32, i32) {
    %c0_i32 = arith.constant 0 : i32
    %c0_i32_0 = arith.constant 0 : i32
    return %arg0, %c0_i32 : i32, i32
  }
  func.func @transform_1(%arg0: i32) -> (i32, i32) {
    %c0_i32 = arith.constant 0 : i32
    %c0_i32_0 = arith.constant 0 : i32
    %c0_i32_1 = arith.constant 0 : i32
    return %c0_i32, %c0_i32_0 : i32, i32
  }
  func.func @transform_2(%arg0: i32) -> (i32, i32) {
    %c0_i32 = arith.constant 0 : i32
    %c0_i32_0 = arith.constant 0 : i32
    %c0_i32_1 = arith.constant 0 : i32
    return %c0_i32, %c0_i32_0 : i32, i32
  }
  func.func @transform_3(%arg0: i32) -> (i32, i32) {
    %c0_i32 = arith.constant 0 : i32
    %c0_i32_0 = arith.constant 0 : i32
    %c0_i32_1 = arith.constant 0 : i32
    return %c0_i32, %c0_i32_0 : i32, i32
  }
  func.func @transform_4(%arg0: i32) -> (i32, i32) {
    %c0_i32 = arith.constant 0 : i32
    %c0_i32_0 = arith.constant 0 : i32
    %c0_i32_1 = arith.constant 0 : i32
    return %c0_i32, %c0_i32_0 : i32, i32
  }
  func.func @transform_5(%arg0: i32) -> (i32, i32) {
    %c0_i32 = arith.constant 0 : i32
    %c0_i32_0 = arith.constant 0 : i32
    %c0_i32_1 = arith.constant 0 : i32
    return %c0_i32, %c0_i32_0 : i32, i32
  }
  func.func @transform_6(%arg0: i32) -> (i32, i32) {
    %c0_i32 = arith.constant 0 : i32
    %c0_i32_0 = arith.constant 0 : i32
    %c0_i32_1 = arith.constant 0 : i32
    return %c0_i32, %c0_i32_0 : i32, i32
  }
  func.func @transform_7(%arg0: i32) -> (i32, i32) {
    %c0_i32 = arith.constant 0 : i32
    %c0_i32_0 = arith.constant 0 : i32
    %c0_i32_1 = arith.constant 0 : i32
    return %c0_i32, %c0_i32_0 : i32, i32
  }
  func.func @transform_8(%arg0: i32) -> (i32, i32) {
    %c0_i32 = arith.constant 0 : i32
    %c0_i32_0 = arith.constant 0 : i32
    %c0_i32_1 = arith.constant 0 : i32
    return %c0_i32, %c0_i32_0 : i32, i32
  }
  func.func @transform_9(%arg0: i32) -> (i32, i32) {
    %c0_i32 = arith.constant 0 : i32
    %c0_i32_0 = arith.constant 0 : i32
    %c0_i32_1 = arith.constant 0 : i32
    return %c0_i32, %c0_i32_0 : i32, i32
  }
  func.func @transform_10(%arg0: i32) -> (i32, i32) {
    %c0_i32 = arith.constant 0 : i32
    %c0_i32_0 = arith.constant 0 : i32
    %c0_i32_1 = arith.constant 0 : i32
    return %c0_i32, %c0_i32_0 : i32, i32
  }
  func.func @transform_11(%arg0: i32) -> (i32, i32) {
    %c0_i32 = arith.constant 0 : i32
    %c0_i32_0 = arith.constant 0 : i32
    %c0_i32_1 = arith.constant 0 : i32
    return %c0_i32, %c0_i32_0 : i32, i32
  }
  func.func @transform_12(%arg0: i32) -> (i32, i32) {
    %c0_i32 = arith.constant 0 : i32
    %c0_i32_0 = arith.constant 0 : i32
    %c0_i32_1 = arith.constant 0 : i32
    return %c0_i32, %c0_i32_0 : i32, i32
  }
  func.func @transform_13(%arg0: i32) -> (i32, i32) {
    %c0_i32 = arith.constant 0 : i32
    %c0_i32_0 = arith.constant 0 : i32
    return %arg0, %c0_i32 : i32, i32
  }
  func.func @transform_14(%arg0: i32) -> (i32, i32) {
    %c0_i32 = arith.constant 0 : i32
    %c0_i32_0 = arith.constant 0 : i32
    return %arg0, %c0_i32 : i32, i32
  }
}

</mosaic_0001>

<bundles_post_ra>
// kernel: tpu_custom_call.1
= control target key start
LH: loop header
LB: loop body
LE: loop exit
PB: predicated region body
PF: predicated region fallthrough
CT: control target
= control target key end

     0   :  { %s1505_s0 = inlined_call_operand.hbm [shape: bf16[16,32], index: 0, kind: input, shape index: {}]   ;;  %s1506_s1 = inlined_call_operand.vmem [shape: bf16[32,32], index: 1, kind: input, shape index: {}]   ;;  %s1507_s2 = inlined_call_operand.vmem [shape: f32[1,32], index: 2, kind: input, shape index: {}]   ;;  %s1508_s3 = inlined_call_operand.vmem [shape: bf16[32,32], index: 3, kind: input, shape index: {}]   ;;  %s1509_s4 = inlined_call_operand.vmem [shape: f32[1,32], index: 4, kind: input, shape index: {}]   ;;  %s1510_s5 = inlined_call_operand.vmem [shape: bf16[32,128], index: 5, kind: input, shape index: {}]   ;;  %s1511_s6 = inlined_call_operand.vmem [shape: f32[1,128], index: 6, kind: input, shape index: {}]   ;;  %s1512_s7 = inlined_call_operand.vmem [shape: bf16[128,32], index: 7, kind: input, shape index: {}]   ;;  %s1513_s8 = inlined_call_operand.vmem [shape: f32[1,32], index: 8, kind: input, shape index: {}]   ;;  %s1514_s9 = inlined_call_operand.vmem [shape: bf16[32,32], index: 9, kind: input, shape index: {}]   ;;  %s1515_s10 = inlined_call_operand.vmem [shape: f32[1,32], index: 10, kind: input, shape index: {}]   ;;  %s1516_s11 = inlined_call_operand.vmem [shape: bf16[32,128], index: 11, kind: input, shape index: {}]   ;;  %s1517_s12 = inlined_call_operand.vmem [shape: f32[1,128], index: 12, kind: input, shape index: {}]   ;;  %s1518_s13 = inlined_call_operand.hbm [shape: bf16[16,128], index: 13, kind: output, shape index: {0}]   ;;  %s1519_s14 = inlined_call_operand.hbm [shape: bf16[16,128], index: 14, kind: output, shape index: {1}]  }
   0x1   :  { %1527 = sst [smem:[#allocation16_spill]] %s1505_s0 }
   0x2   :  { %1528 = sst [smem:[#allocation17_spill]] %s1506_s1 }
   0x3   :  { %1529 = sst [smem:[#allocation18_spill]] %s1507_s2 }
   0x4   :  { %1530 = sst [smem:[#allocation19_spill]] %s1517_s12 }
   0x5   :  { %1531 = sst [smem:[#allocation20_spill]] %s1518_s13 }
   0x6   :  { %1532 = sst [smem:[#allocation21_spill]] %s1519_s14 }
   0x7   :  { %20 = vsyncpa [#allocation3], 0 }
   0x8   :  { %22 = vsyncpa [#allocation3 + $0x1], 0 }
   0x9   :  { %23 = vsyncpa [#allocation4], 0 }
   0xa   :  { %25 = vsyncpa [#allocation4 + $0x1], 0 }
   0xb   :  { %26 = vsyncpa [#allocation7], 0 }
   0xc   :  { %28 = vsyncpa [#allocation7 + $0x1], 0  ;;  %s1282_s29 = smov 0   ;;  %s1284_s30 = smov 0  }
   0xd   :  { %s1286_s15 = smov 0   ;;  %s1288_s16 = smov 0  }
   0xe LB: > { %1533 = sst [smem:[#allocation11_spill]] %s1193_s29  ;;  %s1303_s17 = sadd.s32 4294967295, %s1205_s16   ;;  %s1205_s16 = sphi %s1288_s16, %s1552_s16   ;;  %s1201_s15 = sphi %s1286_s15, %s1554_s15   ;;  %s1197_s30 = sphi %s1284_s30, %s1556_s30   ;;  %s1193_s29 = sphi %s1282_s29, %s1555_s29  }
   0xf   : > { %1534 = sst [smem:[#allocation12_spill]] %s1201_s15  ;;  %s910_s18 = sadd.s32 4294967294, %s1205_s16  }
  0x10   : > { %s1307_s19 = sadd.s32 1, %s1205_s16   ;;  %s41_s20 = sadd.s32 1, %s1201_s15 }
  0x11   : > { %1535 = sst [smem:[#allocation13_spill]] %s1307_s19  ;;  %s38_s21 = ssub.s32 %s1205_s16, %s1307_s19 }
  0x12   : > { %p48_p0 = scmp.ne.s32.totalorder %s1201_s15, %s1197_s30  ;;  %p39_p1 = scmp.eq.s32.totalorder %s38_s21, 0 }
  0x13   : > { %p49_p2 = scmp.eq.s32.totalorder %s1205_s16, 0  ;;  %p54_p3 = scmp.ne.s32.totalorder %s1197_s30, %s1193_s29 }
  0x14   : > { %p55_p4 = scmp.eq.s32.totalorder %s1303_s17, 0  ;;  %p330_p7 = scmp.eq.s32.totalorder %s1303_s17, 1 }
  0x15   : > { %s1319_s22 = scalar_select %p39_p1, %s1201_s15, %s41_s20  }
  0x16   : > { %p1321_p5 = por %p49_p2, %p48_p0  ;;  %p1325_p6 = por %p55_p4, %p54_p3 }
  0x17   : > { %1536 = sst [smem:[#allocation14_spill]] %s1319_s22  ;;  %p336_p8 = scmp.eq.s32.totalorder %s910_s18, 1 }
  0x18   : > { %p1037_p10 = scmp.lt.s32.totalorder %s1205_s16, 2  ;;  %p1332_p11 = por %p330_p7, %p48_p0 }
  0x19   : > { %p1336_p12 = por %p336_p8, %p54_p3  ;;  %s418_s27 = sand.u32 1, %s1201_s15  }
  0x1a   : > { %s914_s28 = sshll.u32 %s1205_s16, 2  ;;  %s913_s20 = sshll.u32 %s418_s27, 2 }
  0x1b   : > { %s1540_s26 = scalar_select %p1336_p12, 1, 0 }
  0x1c   : > { %s1542_s0 = sld [smem:[#allocation16_spill]]  ;;  %s422_s18 = scalar_lea.vmem [#allocation2], %s913_s20 }
  0x1d   : > { %1541 = sst [smem:[#allocation15_spill]] %s1540_s26  ;;  %s430_s14 = sshll.u32 %s422_s18, 4  ;;  %s431_s14 = int_to_ptr.vmem [resolvable:$true] %s430_s14 }
  0x1e   : > { %p1347_p13 = pnand %p1037_p10, %p1321_p5  ;;  %p915_p0 = scmp.ge.s32.totalorder %s1205_s16, 1 }
  0x1f   : > { %p435_p1 = scmp.lt.s32.totalorder %s1205_s16, 3  ;;  %s419_s15 = scalar_lea.sflag [#allocation3], %s418_s27 }
  0x20   : > { %p1081_p3 = pneg %p1347_p13 }
  0x22   : > { %s426_s19 = scalar_lea.hbm %s1542_s0, %s914_s28  ;;  %s1084_s23 = scalar_lea.hbm %s1542_s0, 8 }
  0x23   : > { %s428_s29 = sshll.u32 %s426_s19, 4  ;;  %s429_s29 = int_to_ptr.hbm [resolvable:$true] %s428_s29 }
  0x24   : > { %s1077_s26 = sshra.s32 %s429_s29, 4  ;;  %s1078_s26 = int_to_ptr.hbm [resolvable:$true] %s1077_s26 }
  0x25   : > { %s1079_s13 = scalar_lea.hbm %s1078_s26, 4  ;;  %p1085_p5 = scmp.lt.s32.totalorder %s1078_s26, %s1542_s0 }
  0x26   : > { %p1080_p2 = scmp.ne.s32.totalorder %s1078_s26, %s1079_s13  ;;  %p1086_p8 = scmp.lt.s32.totalorder %s1084_s23, %s1079_s13 }
  0x28   : > { %p1082_p4 = pnand %p1081_p3, %p1080_p2  ;;  %p1087_p10 = por %p1086_p8, %p1085_p5 }
  0x2a   : > { %p1083_p7 = pneg %p1082_p4 }
  0x2c   : > { %p1088_p9 = pnand %p1087_p10, %p1083_p7 }
  0x2e   : > { %1091 = shalt.err (!%p1088_p9)
}
  0x2f   : > { %1029 = dma.hbm_to_vmem [thread:$0]  (!%p1347_p13), %s429_s29, 64, %s431_s14, %s419_s15  }
  0x30   : > { %p436_p2 = pnand %p915_p0, %p435_p1 }
  0x31   : > { %s1368_s27 = sand.u32 (!%p436_p2), 1, %s1197_s30  }
  0x32   : > { %439 = sbr.rel (%p436_p2) target bundleno = 874 (0x36a), region = 72  ;;  %s1371_s26 = sshll.u32 (!%p436_p2), %s1368_s27, 2 }
  0x33   : > { %s442_s13 = scalar_lea.sflag (!%p436_p2), [#allocation3], %s1368_s27  ;;  %s445_s21 = scalar_lea.vmem (!%p436_p2), [#allocation2], %s1371_s26 }
  0x37   : > { %1180 = dma.done.wait (%p1325_p6), %s442_s13, 64  }
  0x38   : > { %1182 = vsyncadd (%p1325_p6), %s442_s13, 4294967232  ;;  %s1544_s1 = sld [smem:[#allocation17_spill]]  ;;  %v497_v2 = vld [vmem:[%s445_s21] sm:$0xf]  ;;  %vm518_vm0 = vcmask 261120   ;;  %v1005_v3 = vld [vmem:[%s1508_s3 + $0x8] sm:$0xff] }
  0x39   : > { %566 = vmatpush.bf16.msra.mxu1 %v1005_v3  ;;  %v1004_v4 = vld [vmem:[%s1508_s3] sm:$0xff]  ;;  %s1545_s2 = sld [smem:[#allocation18_spill]]  ;;  %v1007_v11 = vld [vmem:[%s1510_s5 + $0x8] sm:$0xff]  ;;  %v1015_v13 = vld [vmem:[%s1512_s7 + $0x38] sm:$0xff]  ;;  %s488_s21 = scalar_lea.vmem [#allocation5], %s1371_s26 }
  0x3a   : > { %604 = vmatpush.bf16.msra.mxu2 %v1007_v11  ;;  %v1006_v12 = vld [vmem:[%s1510_s5] sm:$0xff]  ;;  %681 = vmatpush.bf16.msra.mxu3 %v1015_v13  ;;  %v1014_v14 = vld [vmem:[%s1512_s7 + $0x30] sm:$0xff]  ;;  %v1013_v15 = vld [vmem:[%s1512_s7 + $0x28] sm:$0xff]  ;;  %s998_s23 = sshll.u32 %s1303_s17, 2  ;;  %s1546_s13 = sld [smem:[#allocation20_spill]] }
  0x3b   : > { %v1012_v16 = vld [vmem:[%s1512_s7 + $0x20] sm:$0xff]  ;;  %v1011_v17 = vld [vmem:[%s1512_s7 + $0x18] sm:$0xff]  ;;  %v1010_v18 = vld [vmem:[%s1512_s7 + $0x10] sm:$0xff]  ;;  %s790_s14 = sshll.u32 %s488_s21, 4  ;;  %s773_s15 = scalar_lea.sflag [#allocation4], %s1368_s27  ;;  %s791_s14 = int_to_ptr.vmem [resolvable:$true] %s790_s14 }
  0x3c   : > { %v1072_v19 = vld [vmem:[%s1509_s4] ss:$0 sm:$0xff]  ;;  %v1009_v20 = vld [vmem:[%s1512_s7 + $0x8] sm:$0xff] }
  0x3d   : > { %567 = vmatpush.bf16.msra.mxu1 %v1004_v4  ;;  %v1008_v26 = vld [vmem:[%s1512_s7] sm:$0xff]  ;;  %v1017_v27 = vld [vmem:[%s1514_s9 + $0x8] sm:$0xff] }
  0x3e   : > { %v1003_v0 = vld [vmem:[%s1544_s1 + $0x8] sm:$0xff]  ;;  %v1002_v1 = vld [vmem:[%s1544_s1] sm:$0xff]  ;;  %605 = vmatpush.bf16.msra.mxu2 %v1006_v12  ;;  %682 = vmatpush.bf16.msra.mxu3 %v1014_v14 }
  0x3f   : > { %528 = vmatpush.bf16.msra.mxu0 %v1003_v0  ;;  %v1071_v5 = vld [vmem:[%s1545_s2] ss:$0 sm:$0xff]  ;;  %v1019_v34 = vld [vmem:[%s1516_s11 + $0x8] sm:$0xff] }
  0x40   : > { %v1016_v28 = vld [vmem:[%s1514_s9] sm:$0xff]  ;;  %s788_s12 = scalar_lea.hbm %s1546_s13, %s998_s23  ;;  %s1127_s17 = scalar_lea.hbm %s1546_s13, 8 }
  0x41   : > { %v1073_v29 = vld [vmem:[%s1511_s6] ss:$0 sm:$0xff]  ;;  %763 = vmatpush.bf16.msrb.mxu1 %v1019_v34  ;;  %s792_s29 = sshll.u32 %s788_s12, 4  ;;  %s793_s29 = int_to_ptr.hbm [resolvable:$true] %s792_s29 }
  0x42   : > { %683 = vmatpush.bf16.msra.mxu3 %v1013_v15  ;;  %v1018_v35 = vld [vmem:[%s1516_s11] sm:$0xff]  ;;  %s1121_s18 = sshra.s32 %s793_s29, 4  ;;  %s1122_s18 = int_to_ptr.hbm [resolvable:$true] %s1121_s18 }
  0x43   : > { %529 = vmatpush.bf16.msra.mxu0 %v1002_v1  ;;  %v1074_v36 = vld [vmem:[%s1513_s8] ss:$0 sm:$0xff]  ;;  %s1123_s19 = scalar_lea.hbm %s1122_s18, 4  ;;  %p1128_p0 = scmp.lt.s32.totalorder %s1122_s18, %s1546_s13 }
  0x44   : > { %v1075_v42 = vld [vmem:[%s1515_s10] ss:$0 sm:$0xff]  ;;  %p1124_p6 = scmp.ne.s32.totalorder %s1122_s18, %s1123_s19  ;;  %p1129_p1 = scmp.lt.s32.totalorder %s1127_s17, %s1123_s19 }
  0x45   : > { %764 = vmatpush.bf16.msrb.mxu1 %v1018_v35 }
  0x46   : > { %927 = vmatmul.msk.bf16.vlgmr.msra.gmra.mxu0 %vm518_vm0, %v497_v2  ;;  %684 = vmatpush.bf16.msra.mxu3 %v1012_v16  ;;  %p1125_p9 = pnand %p1124_p6, %p1332_p11  ;;  %p1130_p3 = por %p1129_p1, %p1128_p0 }
  0x47   : > { %725 = vmatpush.bf16.msrb.mxu0 %v1017_v27 }
  0x48   : > { %p1126_p13 = pneg %p1125_p9 }
  0x4a   : > { %685 = vmatpush.bf16.msra.mxu3 %v1011_v17  ;;  %p1131_p4 = pnand %p1130_p3, %p1126_p13 }
  0x4b   : > { %726 = vmatpush.bf16.msrb.mxu0 %v1016_v28 }
  0x4e   : > { %686 = vmatpush.bf16.msra.mxu3 %v1010_v18 }
  0x52   : > { %687 = vmatpush.bf16.msra.mxu3 %v1009_v20 }
  0x56   : > { %688 = vmatpush.bf16.msra.mxu3 %v1008_v26 }
  0xc3   : > { %v531_v6 = vpop.f32.mrf.mxu0 }
  0xc4   : > { %v532_v7 = vadd.f32 %v1071_v5, %v531_v6 }
  0xc6   : > { %v535_v8 = vmax.f32 %v532_v7, 0.0 }
  0xc8   : > { %v536_v9 = vpack.c.bf16 %v535_v8, %v535_v8 }
  0xca   : > { %936 = vmatmul.msk.bf16.vlgmr.msra.gmra.mxu1 %vm518_vm0, %v536_v9 }
  0xcb   : > { %v533_v10 = vpop.f32.mrf.mxu0 }
 0x147   : > { %v569_v21 = vpop.f32.mrf.mxu1 }
 0x148   : > { %v570_v22 = vadd.f32 %v1072_v19, %v569_v21 }
 0x14a   : > { %v573_v23 = vmax.f32 %v570_v22, 0.0 }
 0x14c   : > { %v574_v24 = vpack.c.bf16 %v573_v23, %v573_v23 }
 0x14e   : > { %945 = vmatmul.msk.bf16.vlgmr.msra.gmra.mxu2 %vm518_vm0, %v574_v24 }
 0x14f   : > { %v571_v25 = vpop.f32.mrf.mxu1 }
 0x1d1   : > { %v607_v30 = vpop.f32.mrf.mxu2 }
 0x1d2   : > { %v608_v31 = vadd.f32 %v1073_v29, %v607_v30 }
 0x1d4   : > { %v611_v32 = vpack.c.bf16 %v608_v31, %v608_v31 }
 0x1d6   : > { %612 = vst [vmem:[%s488_s21] sm:$0xf] %v611_v32  ;;  %689 = vmatmul.bf16.vlgmr.msra.gmra.mxu3 %v611_v32 }
 0x1d9   : > { %v609_v33 = vpop.f32.mrf.mxu2 }
 0x259   : > { %v690_v37 = vpop.f32.mrf.mxu3 }
 0x25a   : > { %v691_v38 = vadd.f32 %v1074_v36, %v690_v37 }
 0x25c   : > { %v694_v39 = vmax.f32 %v691_v38, 0.0 }
 0x25e   : > { %v695_v40 = vpack.c.bf16 %v694_v39, %v694_v39 }
 0x260   : > { %986 = vmatmul.msk.bf16.vlgmr.msrb.gmra.mxu0 %vm518_vm0, %v695_v40 }
 0x261   : > { %v692_v41 = vpop.f32.mrf.mxu3 }
 0x2dd   : > { %v728_v43 = vpop.f32.mrf.mxu0 }
 0x2de   : > { %v729_v44 = vadd.f32 %v1075_v42, %v728_v43 }
 0x2e0   : > { %v732_v45 = vmax.f32 %v729_v44, 0.0 }
 0x2e2   : > { %v733_v46 = vpack.c.bf16 %v732_v45, %v732_v45 }
 0x2e4   : > { %995 = vmatmul.msk.bf16.vlgmr.msrb.gmra.mxu1 %vm518_vm0, %v733_v46 }
 0x2e5   : > { %v730_v47 = vpop.f32.mrf.mxu0 }
 0x2e6   : > { %1134 = shalt.err (!%p1131_p4)
}
 0x2e7   : > { %1022 = dma.vmem_to_hbm [thread:$0]  (%p1332_p11), %s791_s14, 64, %s793_s29, %s773_s15  }
 0x2e8   : > { %s1547_s20 = sld [smem:[#allocation19_spill]]  ;;  %s495_s0 = scalar_lea.vmem [#allocation6], %s1371_s26 }
 0x2e9   : > { %s1548_s22 = sld [smem:[#allocation21_spill]]  ;;  %s804_s1 = sshll.u32 %s495_s0, 4  ;;  %s805_s1 = int_to_ptr.vmem [resolvable:$true] %s804_s1 }
 0x2ea   : > { %s778_s19 = scalar_lea.sflag [#allocation7], %s1368_s27 }
 0x2ee   : > { %v1076_v48 = vld [vmem:[%s1547_s20] ss:$0 sm:$0xff] }
 0x2ef   : > { %s802_s2 = scalar_lea.hbm %s1548_s22, %s998_s23  ;;  %s1155_s23 = scalar_lea.hbm %s1548_s22, 8 }
 0x2f0   : > { %s806_s18 = sshll.u32 %s802_s2, 4  ;;  %s807_s18 = int_to_ptr.hbm [resolvable:$true] %s806_s18 }
 0x2f1   : > { %s1149_s14 = sshra.s32 %s807_s18, 4  ;;  %s1150_s14 = int_to_ptr.hbm [resolvable:$true] %s1149_s14 }
 0x2f2   : > { %s1151_s29 = scalar_lea.hbm %s1150_s14, 4  ;;  %p1156_p10 = scmp.lt.s32.totalorder %s1150_s14, %s1548_s22 }
 0x2f3   : > { %p1152_p7 = scmp.ne.s32.totalorder %s1150_s14, %s1151_s29  ;;  %p1157_p2 = scmp.lt.s32.totalorder %s1155_s23, %s1151_s29 }
 0x2f5   : > { %p1153_p5 = pnand %p1152_p7, %p1332_p11  ;;  %p1158_p6 = por %p1157_p2, %p1156_p10 }
 0x2f7   : > { %p1154_p8 = pneg %p1153_p5 }
 0x2f9   : > { %p1159_p9 = pnand %p1158_p6, %p1154_p8 }
 0x361   : > { %v766_v49 = vpop.f32.mrf.mxu1 }
 0x362   : > { %v767_v50 = vadd.f32 %v1076_v48, %v766_v49 }
 0x364   : > { %v770_v51 = vpack.c.bf16 %v767_v50, %v767_v50 }
 0x366   : > { %771 = vst [vmem:[%s495_s0] sm:$0xf] %v770_v51 }
 0x367   : > { %1162 = shalt.err (!%p1159_p9)
}
 0x368   : > { %1023 = dma.vmem_to_hbm [thread:$0]  (%p1332_p11), %s805_s1, 64, %s807_s18, %s778_s19  }
 0x369   : > { %v768_v52 = vpop.f32.mrf.mxu1 }
 0x36a PF: > { %s1549_s2 = sld [smem:[#allocation11_spill]]  ;;  %p1551_p13 = scmp.ge.s32.totalorder %s1205_s16, 2 }
 0x36c   : > { %p1031_p0 = pnand %p1551_p13, %p1336_p12 }
 0x36e   : > { %p1032_p1 = pneg %p1031_p0 }
 0x370   : > { %s818_s28 = sand.u32 1, %s1549_s2  }
 0x371   : > { %s819_s20 = scalar_lea.sflag [#allocation4], %s818_s28 }
 0x372   : > { %1184 = dma.done.wait (%p1032_p1), %s819_s20, 64  }
 0x373   : > { %1186 = vsyncadd (%p1032_p1), %s819_s20, 4294967232  ;;  %s829_s12 = scalar_lea.sflag [#allocation7], %s818_s28 }
 0x374   : > { %1188 = dma.done.wait (%p1032_p1), %s829_s12, 64  }
 0x375   : > { %1190 = vsyncadd (%p1032_p1), %s829_s12, 4294967232  ;;  %s1552_s16 = sld [smem:[#allocation13_spill]]  ;;  %s1555_s29 = smov %s1197_s30 }
 0x376   : > { %s1553_s25 = sld [smem:[#allocation12_spill]] }
 0x377   : > { %s1554_s15 = sld [smem:[#allocation14_spill]] }
 0x37b   : > { %p31_p11 = scmp.ge.s32.totalorder %s1552_s16, 4  }
 0x37c   : > { %s1556_s30 = smov %s1553_s25 }
 0x37d   :  { %33 = sbr.rel (!%p31_p11) target bundleno = 14 (0xe), region = 134 }
 0x382   :  { %835 = vsyncpa [#allocation3], 1 }
 0x383   :  { %837 = vsyncpa [#allocation3 + $0x1], 1 }
 0x384   :  { %838 = vsyncpa [#allocation4], 1 }
 0x385   :  { %840 = vsyncpa [#allocation4 + $0x1], 1 }
 0x386   :  { %841 = vsyncpa [#allocation7], 1 }
 0x387   :  { %843 = vsyncpa [#allocation7 + $0x1], 1 }

</bundles_post_ra>
